<compile_context>
chip_gen: v6e
topology: v6e:2x2x1
jax: 0.10.0
libtpu: 0.0.40
codegen_flags: <defaults>
</compile_context>

<pallas_src>
import functools

import jax
import jax.numpy as jnp
from jax.experimental import pallas as pl
from jax.experimental.pallas import tpu as pltpu

_LANES = 128
_SUBLANES = 8
_CHUNK_ROWS = 256     # rows folded per inner-loop step on the large path
_SMALL_ROWS = 512     # below this row count, use the single-tile small path


def _round_up(n, m):
    return ((n + m - 1) // m) * m


def _contrastive_partial_kernel(x_ref, t_ref, p_ref, *, margin, rows, tm, chunk):
    """One grid step: fold a (tm, 128) row tile into an (8, 128) f32 partial."""
    i = pl.program_id(0)
    # Rows of this tile that are inside the real array.  Rows beyond this are
    # ragged-boundary-block garbage and must not contribute.
    valid_rows = jnp.minimum(rows - i * tm, tm)

    n_chunks = tm // chunk
    row_iota = jax.lax.broadcasted_iota(jnp.int32, (chunk, 1), 0)

    def body(c, acc):
        r0 = pl.multiple_of(c * chunk, chunk)
        x = x_ref[pl.ds(r0, chunk), :].astype(jnp.float32)
        t = t_ref[pl.ds(r0, chunk), :].astype(jnp.float32)

        # t*x^2 + (1-t)*clamp(margin - x, 0)^2  ==  h2 + t*(x^2 - h2)
        h = jnp.maximum(margin - x, 0.0)
        h2 = h * h
        val = h2 + t * (x * x - h2)

        # Zero any rows past the ragged boundary of the last tile (select, so
        # garbage NaN/inf in masked rows never propagates).
        keep = (row_iota + r0) < valid_rows
        val = jnp.where(keep, val, 0.0)

        # Fold chunk rows down to one (8,128) vreg: sublane-major reshape (no
        # tile-boundary crossing) + axis-0 sum = plain VPU vector adds.
        part = jnp.sum(
            val.reshape(chunk // _SUBLANES, _SUBLANES, _LANES), axis=0
        )
        return acc + part

    acc0 = jnp.zeros((_SUBLANES, _LANES), jnp.float32)
    if n_chunks == 1:
        acc = body(jnp.int32(0), acc0)
    else:
        acc = jax.lax.fori_loop(0, n_chunks, body, acc0, unroll=2)
    p_ref[0] = acc


def contrastive_loss(x, target, margin=2.0, *, row_tile=8192):
    """Pallas TPU implementation of ContrastiveLoss.forward."""
    assert x.shape == target.shape
    n_total = x.size
    if n_total == 0:
        # torch.mean over an empty tensor is NaN.
        return jnp.asarray(jnp.nan, dtype=jnp.float32)

    xf = x.reshape(-1)
    tf = target.reshape(-1)

    rows_raw = pl.cdiv(n_total, _LANES)

    if rows_raw < _SMALL_ROWS:
        # Small path: single tile covering the whole (padded) slab; block
        # equals the full array dims so any dtype tiling is legal.
        tm = _round_up(rows_raw, _SUBLANES)
        chunk = tm
        padded_n = tm * _LANES
    else:
        # Large path: tiles are multiples of 256 rows (int8/bf16-safe), with
        # >=2 grid steps (even-preferred) so a 2-TC chip keeps both cores busy.
        row_tile = max(_CHUNK_ROWS, _round_up(row_tile, _CHUNK_ROWS))
        nt = max(2, pl.cdiv(rows_raw, row_tile))
        if nt % 2:
            nt += 1
        tm = min(_round_up(pl.cdiv(rows_raw, nt), _CHUNK_ROWS), row_tile)
        chunk = _CHUNK_ROWS
        padded_n = rows_raw * _LANES   # pad only to the 128-lane boundary

    # Tiny pad (never a full-tile pad): x=0 / target=1 contribute exactly 0.
    # The common aligned case (n % 128 == 0, rows >= 512) is fully copy-free.
    pad = padded_n - n_total
    if pad:
        xf = jnp.concatenate([xf, jnp.zeros((pad,), dtype=xf.dtype)])
        tf = jnp.concatenate([tf, jnp.ones((pad,), dtype=tf.dtype)])

    rows = padded_n // _LANES
    num_tiles = pl.cdiv(rows, tm)

    x2 = xf.reshape(rows, _LANES)
    t2 = tf.reshape(rows, _LANES)

    kernel = functools.partial(
        _contrastive_partial_kernel,
        margin=float(margin), rows=rows, tm=tm, chunk=chunk,
    )

    # Advisory cost: HBM-bound; ~8 elementwise ops per element.
    bytes_accessed = (
        x2.size * x2.dtype.itemsize
        + t2.size * t2.dtype.itemsize
        + num_tiles * _SUBLANES * _LANES * 4
    )
    cost = pl.CostEstimate(
        flops=8 * n_total, transcendentals=0, bytes_accessed=bytes_accessed
    )

    # Double-buffered input blocks + slack; raised past v5e's 16 MiB default,
    # kept under v7x's 64 MiB physical VMEM.
    vmem_need = 2 * tm * _LANES * (x2.dtype.itemsize + t2.dtype.itemsize) + (4 << 20)
    vmem_limit = min(max(vmem_need, 32 << 20), 64 << 20)

    partials = pl.pallas_call(
        kernel,
        out_shape=jax.ShapeDtypeStruct(
            (num_tiles, _SUBLANES, _LANES), jnp.float32
        ),
        grid_spec=pltpu.PrefetchScalarGridSpec(
            num_scalar_prefetch=0,
            grid=(num_tiles,),
            in_specs=[
                pl.BlockSpec((tm, _LANES), lambda i: (i, 0)),
                pl.BlockSpec((tm, _LANES), lambda i: (i, 0)),
            ],
            out_specs=pl.BlockSpec(
                (1, _SUBLANES, _LANES), lambda i: (i, 0, 0)
            ),
        ),
        compiler_params=pltpu.CompilerParams(
            dimension_semantics=("parallel",),
            vmem_limit_bytes=vmem_limit,
        ),
        cost_estimate=cost,
    )(x2, t2)

    # Tiny final reduction + mean/2 in plain JAX (negligible vs. HBM stream).
    # Divisor uses the true (unpadded) element count.
    return jnp.sum(partials) / (2.0 * n_total)


def _reference(x, target, margin=2.0):
    x = x.astype(jnp.float32)
    t = target.astype(jnp.float32)
    return (
        jnp.mean(t * x * x + (1.0 - t) * jnp.square(jnp.clip(margin - x, 0.0)))
        / 2.0
    )


if __name__ == "__main__":
    key = jax.random.PRNGKey(0)
    kx, kt, kx2, kt2, kx3, kt3 = jax.random.split(key, 6)

    # 1) Aligned shape, f32 target (fully copy-free path, single tile).
    x = jnp.abs(jax.random.normal(kx, (8, 128), dtype=jnp.float32)) * 2.0
    t = jax.random.bernoulli(kt, 0.5, (8, 128)).astype(jnp.float32)
    out = jax.block_until_ready(contrastive_loss(x, t, margin=2.0))
    ref = _reference(x, t, margin=2.0)
    assert jnp.allclose(out, ref, rtol=1e-5, atol=1e-6), (out, ref)

    # 2) Ragged tiny shape, int8 target (tiny lane pad + narrow-dtype stream).
    x2 = jnp.abs(jax.random.normal(kx2, (5, 37), dtype=jnp.float32)) * 2.0
    t2 = jax.random.bernoulli(kt2, 0.5, (5, 37)).astype(jnp.int8)
    out2 = jax.block_until_ready(contrastive_loss(x2, t2, margin=2.0))
    ref2 = _reference(x2, t2, margin=2.0)
    assert jnp.allclose(out2, ref2, rtol=1e-5, atol=1e-6), (out2, ref2)

    # 3) Multi-tile path with a ragged last tile (in-kernel row mask), int8.
    x3 = jnp.abs(jax.random.normal(kx3, (300, 280), dtype=jnp.float32)) * 2.0
    t3 = jax.random.bernoulli(kt3, 0.5, (300, 280)).astype(jnp.int8)
    out3 = jax.block_until_ready(contrastive_loss(x3, t3, margin=2.0))
    ref3 = _reference(x3, t3, margin=2.0)
    assert jnp.allclose(out3, ref3, rtol=1e-5, atol=1e-6), (out3, ref3)

    print("KERNEL_OK")
</pallas_src>

<mosaic_0001>
module attributes {stable_mosaic.version = 11 : i64} {
  func.func @_contrastive_partial_kernel(%arg0: i32, %arg1: memref<8x128xf32, #tpu.memory_space<vmem>>, %arg2: memref<8x128xf32, #tpu.memory_space<vmem>>, %arg3: memref<1x8x128xf32, #tpu.memory_space<vmem>>) attributes {dimension_semantics = [#tpu.dimension_semantics<parallel>], iteration_bounds = array<i64: 1>, scalar_prefetch = 0 : i64, scratch_operands = 0 : i64, tpu.core_type = #tpu.core_type<tc>, window_params = [{transform_indices = @transform_0, window_bounds = array<i64: 8, 128>}, {transform_indices = @transform_1, window_bounds = array<i64: 8, 128>}, {transform_indices = @transform_2, window_bounds = array<i64: 1, 8, 128>}]} {
    %c8_i32 = arith.constant 8 : i32
    %0 = arith.muli %arg0, %c8_i32 : i32
    %c8_i32_0 = arith.constant 8 : i32
    %1 = arith.subi %c8_i32_0, %0 : i32
    %c8_i32_1 = arith.constant 8 : i32
    %2 = arith.minsi %1, %c8_i32_1 : i32
    %3 = tpu.iota {dimensions = array<i32: 0>} : vector<8x1xi32>
    %cst = arith.constant 0.000000e+00 : f32
    %4 = vector.broadcast %cst : f32 to vector<8x128xf32>
    %c0_i32 = arith.constant 0 : i32
    %c8_i32_2 = arith.constant 8 : i32
    %5 = arith.muli %c0_i32, %c8_i32_2 : i32
    %6 = tpu.assume_multiple %5, 8 : i32
    %7 = arith.index_cast %6 : i32 to index
    %c0 = arith.constant 0 : index
    %8 = vector.load %arg1[%7, %c0] : memref<8x128xf32, #tpu.memory_space<vmem>>, vector<8x128xf32>
    %9 = arith.index_cast %6 : i32 to index
    %c0_3 = arith.constant 0 : index
    %10 = vector.load %arg2[%9, %c0_3] : memref<8x128xf32, #tpu.memory_space<vmem>>, vector<8x128xf32>
    %cst_4 = arith.constant 2.000000e+00 : f32
    %11 = vector.broadcast %cst_4 : f32 to vector<8x128xf32>
    %12 = arith.subf %11, %8 : vector<8x128xf32>
    %cst_5 = arith.constant 0.000000e+00 : f32
    %13 = vector.broadcast %cst_5 : f32 to vector<8x128xf32>
    %14 = arith.maximumf %12, %13 : vector<8x128xf32>
    %15 = arith.mulf %14, %14 : vector<8x128xf32>
    %16 = arith.mulf %8, %8 : vector<8x128xf32>
    %17 = arith.subf %16, %15 : vector<8x128xf32>
    %18 = arith.mulf %10, %17 : vector<8x128xf32>
    %19 = arith.addf %15, %18 : vector<8x128xf32>
    %20 = vector.broadcast %6 : i32 to vector<8x1xi32>
    %21 = arith.addi %3, %20 : vector<8x1xi32>
    %22 = vector.broadcast %2 : i32 to vector<8x1xi32>
    %23 = arith.cmpi slt, %21, %22 : vector<8x1xi32>
    %cst_6 = arith.constant 0.000000e+00 : f32
    %24 = vector.shape_cast %23 : vector<8x1xi1> to vector<8x1xi1>
    %25 = vector.broadcast %24 : vector<8x1xi1> to vector<8x128xi1>
    %26 = vector.broadcast %cst_6 : f32 to vector<8x128xf32>
    %27 = arith.select %25, %19, %26 : vector<8x128xi1>, vector<8x128xf32>
    %28 = vector.shape_cast %27 : vector<8x128xf32> to vector<1x8x128xf32>
    %cst_7 = arith.constant dense<0.000000e+00> : vector<8x128xf32>
    %29 = vector.multi_reduction <add>, %28, %cst_7 [0] : vector<1x8x128xf32> to vector<8x128xf32>
    %30 = arith.addf %4, %29 : vector<8x128xf32>
    %c0_8 = arith.constant 0 : index
    %c0_9 = arith.constant 0 : index
    %c0_10 = arith.constant 0 : index
    %31 = vector.load %arg3[%c0_8, %c0_9, %c0_10] : memref<1x8x128xf32, #tpu.memory_space<vmem>>, vector<1x8x128xf32>
    %32 = vector.shape_cast %31 : vector<1x8x128xf32> to vector<8x128xf32>
    %33 = vector.shape_cast %30 : vector<8x128xf32> to vector<1x8x128xf32>
    tpu.vector_store %arg3[%c0_8, %c0_9, %c0_10], %33 {strides = array<i32>} : memref<1x8x128xf32, #tpu.memory_space<vmem>>, vector<1x8x128xf32>,
    return
  }
  func.func @transform_0(%arg0: i32) -> (i32, i32) {
    %c0_i32 = arith.constant 0 : i32
    %c0_i32_0 = arith.constant 0 : i32
    return %arg0, %c0_i32 : i32, i32
  }
  func.func @transform_1(%arg0: i32) -> (i32, i32) {
    %c0_i32 = arith.constant 0 : i32
    %c0_i32_0 = arith.constant 0 : i32
    return %arg0, %c0_i32 : i32, i32
  }
  func.func @transform_2(%arg0: i32) -> (i32, i32, i32) {
    %c0_i32 = arith.constant 0 : i32
    %c0_i32_0 = arith.constant 0 : i32
    %c0_i32_1 = arith.constant 0 : i32
    return %arg0, %c0_i32, %c0_i32_0 : i32, i32, i32
  }
}

</mosaic_0001>

<bundles_post_ra>
// kernel: tpu_custom_call.1
= control target key start
LH: loop header
LB: loop body
LE: loop exit
PB: predicated region body
PF: predicated region fallthrough
CT: control target
= control target key end

     0   :  { %7 = vsyncpa [#allocation3], 0  ;;  %s173_s0 = inlined_call_operand.hbm [shape: f32[8,128], index: 0, kind: input, shape index: {}]   ;;  %s174_s1 = inlined_call_operand.hbm [shape: f32[8,128], index: 1, kind: input, shape index: {}]   ;;  %s175_s2 = inlined_call_operand.hbm [shape: f32[1,8,128], index: 2, kind: output, shape index: {}]  }
   0x1   :  { %8 = vsyncpa [#allocation6], 0 }
   0x2   :  { %9 = vsyncpa [#allocation4], 0  ;;  %s146_s9 = smov [#allocation2]   ;;  %s147_s11 = smov [#allocation5]  }
   0x3   :  { %s16_s10 = sshll.u32 %s146_s9, 4  ;;  %s26_s12 = sshll.u32 %s147_s11, 4  ;;  %s17_s10 = int_to_ptr.vmem [resolvable:$true] %s16_s10  ;;  %s27_s12 = int_to_ptr.vmem [resolvable:$true] %s26_s12 }
   0x4   :  { %s88_s13 = scalar_lea.vmem %s17_s10, 128  ;;  %p93_p1 = scmp.lt.s32.totalorder %s17_s10, %s17_s10 }
   0x5   :  { %p89_p0 = scmp.ne.s32.totalorder %s17_s10, %s88_s13  ;;  %p94_p2 = scmp.lt.s32.totalorder %s88_s13, %s88_s13 }
   0x7   :  { %p95_p3 = por %p94_p2, %p93_p1 }
   0x9   :  { %p96_p4 = pnand %p95_p3, %p89_p0 }
   0xb   :  { %99 = shalt.err (!%p96_p4)
}
   0xc   :  { %19 = dma.hbm_to_vmem [thread:$0]  %s173_s0, 128, %s17_s10, [#allocation3]  }
   0xd   :  { %s108_s16 = scalar_lea.vmem %s27_s12, 128  ;;  %p113_p6 = scmp.lt.s32.totalorder %s27_s12, %s27_s12 }
   0xe   :  { %p109_p5 = scmp.ne.s32.totalorder %s27_s12, %s108_s16  ;;  %p114_p7 = scmp.lt.s32.totalorder %s108_s16, %s108_s16 }
  0x10   :  { %p115_p8 = por %p114_p7, %p113_p6 }
  0x12   :  { %p116_p9 = pnand %p115_p8, %p109_p5 }
  0x14   :  { %119 = shalt.err (!%p116_p9)
}
  0x15   :  { %29 = dma.hbm_to_vmem [thread:$0]  %s174_s1, 128, %s27_s12, [#allocation6]  }
  0x16   :  { %140 = dma.done.wait [#allocation3], 128  }
  0x17   :  { %141 = vsyncadd [#allocation3], 4294967168 }
  0x18   :  { %142 = dma.done.wait [#allocation6], 128  }
  0x19   :  { %143 = vsyncadd [#allocation6], 4294967168  ;;  %v42_v0 = vld [vmem:[#allocation2] sm:$0xff]  ;;  %v43_v5 = vld [vmem:[#allocation5] sm:$0xff]  ;;  %s148_s0 = smov [#allocation7]  }
  0x1a   :  { %v44_v1 = vsub.f32 2.0, %v42_v0  ;;  %v47_v3 = vmul.f32 %v42_v0, %v42_v0  ;;  %s67_s19 = sshll.u32 %s148_s0, 4  ;;  %s68_s19 = int_to_ptr.vmem [resolvable:$true] %s67_s19 }
  0x1b   :  { %s120_s20 = scalar_lea.vmem %s68_s19, 128  ;;  %p125_p11 = scmp.lt.s32.totalorder %s68_s19, %s68_s19 }
  0x1c   :  { %v45_v2 = vmax.f32 %v44_v1, 0.0  ;;  %p121_p10 = scmp.ne.s32.totalorder %s68_s19, %s120_s20  ;;  %p126_p12 = scmp.lt.s32.totalorder %s120_s20, %s120_s20 }
  0x1e   :  { %v46_v4 = vmul.f32 %v45_v2, %v45_v2  ;;  %p127_p13 = por %p126_p12, %p125_p11 }
  0x20   :  { %v48_v6 = vsub.f32 %v47_v3, %v46_v4  ;;  %p128_p0 = pnand %p127_p13, %p121_p10 }
  0x22   :  { %v49_v7 = vmul.f32 %v48_v6, %v43_v5 }
  0x24   :  { %v50_v8 = vadd.f32 %v49_v7, %v46_v4 }
  0x26   :  { %60 = vst [vmem:[#allocation7] sm:$0xff] %v50_v8 }
  0x27   :  { %131 = shalt.err (!%p128_p0)
}
  0x28   :  { %70 = dma.vmem_to_hbm [thread:$0]  %s68_s19, 128, %s175_s2, [#allocation4]  }
  0x29   :  { %144 = dma.done.wait [#allocation4], 128  }
  0x2a   :  { %145 = vsyncadd [#allocation4], 4294967168 }
  0x2b   :  { %74 = vsyncpa [#allocation3], 1 }
  0x2c   :  { %75 = vsyncpa [#allocation6], 1 }
  0x2d   :  { %76 = vsyncpa [#allocation4], 1 }

</bundles_post_ra>
